<compile_context>
chip_gen: v5e
topology: v5e:2x2
jax: 0.10.0
libtpu: 0.0.40
codegen_flags: <defaults>
</compile_context>

<pallas_src>
import jax
import jax.numpy as jnp
from jax.experimental import pallas as pl
from jax.experimental.pallas import tpu as pltpu

HIDDEN = 2 ** 7   # 128
IN_DIM = 2
OUT_DIM = 3
OUT_PAD = 128     # lane-dense padded fc3 output width


def mlp_kernel(x_ref, w1_ref, b1_ref, w2_ref, b2_ref, w3_ref, b3_ref, o_ref):
    # fc1: K=2 -> two VPU multiply-adds (MXU pass would be >98% wasted depth).
    x = x_ref[...]                                                   # (TB, 2)
    h1 = jnp.tanh(
        x[:, 0:1] * w1_ref[0:1, :]
        + x[:, 1:2] * w1_ref[1:2, :]
        + b1_ref[...]
    )                                                                # (TB, 128)

    # fc2: K=128 -> MXU, f32 accumulation.
    h2 = jnp.tanh(
        jnp.dot(h1, w2_ref[...], preferred_element_type=jnp.float32) + b2_ref[...]
    )                                                                # (TB, 128)

    # Dropout(p=0.1): identity at inference time (module.eval()).
    # TODO(synk): training-mode dropout would use pltpu.prng_seed + prng_random_bits.

    # fc3: padded to 128 lanes so the store is a full-width unmasked vst.
    out = jnp.dot(h2, w3_ref[...], preferred_element_type=jnp.float32) + b3_ref[...]
    o_ref[...] = out.astype(o_ref.dtype)                             # (TB, 128)


def net_forward(x, params, *, tile_b=512):
    """Forward pass. x: (B, 2) f32. Returns (B, 3) f32 logits."""
    w1, b1, w2, b2, w3, b3 = params
    B = x.shape[0]

    # Lane-dense output: zero-pad fc3 weights/bias from 3 -> 128 columns.
    w3p = jnp.zeros((HIDDEN, OUT_PAD), w3.dtype).at[:, :OUT_DIM].set(w3)
    b3p = jnp.zeros((1, OUT_PAD), b3.dtype).at[:, :OUT_DIM].set(b3)

    # Batch tile: multiple of 8 sublanes, capped at tile_b; pad B to a full
    # multiple of TB so every grid step sees a full block.
    TB = min(tile_b, max(8, ((B + 7) // 8) * 8))
    num_tiles = pl.cdiv(B, TB)
    B_pad = num_tiles * TB
    if B_pad != B:
        x = jnp.pad(x, ((0, B_pad - B), (0, 0)))

    def resident(arr):
        # Weights / biases: same block every grid step -> stay VMEM-resident.
        return pl.BlockSpec(arr.shape, lambda i: (0, 0))

    flops = 2 * B_pad * HIDDEN * (IN_DIM + HIDDEN + OUT_PAD)
    transcendentals = 2 * B_pad * HIDDEN
    bytes_accessed = 4 * (
        B_pad * IN_DIM + B_pad * OUT_PAD
        + IN_DIM * HIDDEN + HIDDEN * HIDDEN + HIDDEN * OUT_PAD
        + 2 * HIDDEN + OUT_PAD
    )

    out = pl.pallas_call(
        mlp_kernel,
        out_shape=jax.ShapeDtypeStruct((B_pad, OUT_PAD), jnp.float32),
        grid=(num_tiles,),
        in_specs=[
            pl.BlockSpec((TB, IN_DIM), lambda i: (i, 0)),   # x: tiled over batch
            resident(w1), resident(b1),
            resident(w2), resident(b2),
            resident(w3p), resident(b3p),
        ],
        out_specs=pl.BlockSpec((TB, OUT_PAD), lambda i: (i, 0)),
        compiler_params=pltpu.CompilerParams(
            dimension_semantics=("parallel",),               # megacore on v7x
        ),
        cost_estimate=pl.CostEstimate(
            flops=flops,
            transcendentals=transcendentals,
            bytes_accessed=bytes_accessed,
        ),
    )(x, w1, b1, w2, b2, w3p, b3p)

    return out[:B, :OUT_DIM]


def init_params(key):
    """Deterministic param init mimicking nn.Linear's U(-1/sqrt(fan_in), ...)."""
    def linear(k, fan_in, fan_out):
        kw, kb = jax.random.split(k)
        bound = 1.0 / jnp.sqrt(fan_in)
        # stored as (in, out) so forward is x @ W + b
        w = jax.random.uniform(kw, (fan_in, fan_out), jnp.float32, -bound, bound)
        b = jax.random.uniform(kb, (1, fan_out), jnp.float32, -bound, bound)
        return w, b

    k1, k2, k3 = jax.random.split(key, 3)
    w1, b1 = linear(k1, IN_DIM, HIDDEN)
    w2, b2 = linear(k2, HIDDEN, HIDDEN)
    w3, b3 = linear(k3, HIDDEN, OUT_DIM)
    return w1, b1, w2, b2, w3, b3


def reference_forward(x, params):
    w1, b1, w2, b2, w3, b3 = params
    h1 = jnp.tanh(x @ w1 + b1)
    h2 = jnp.tanh(h1 @ w2 + b2)
    return h2 @ w3 + b3


if __name__ == "__main__":
    key = jax.random.PRNGKey(0)
    k_x, k_x2, k_p = jax.random.split(key, 3)
    params = init_params(k_p)

    # Small demo batch (single tile).
    B = 8
    x = jax.random.normal(k_x, (B, IN_DIM), dtype=jnp.float32)
    out = jax.block_until_ready(net_forward(x, params))
    ref = reference_forward(x, params)
    assert out.shape == (B, OUT_DIM)
    assert jnp.allclose(out, ref, atol=1e-5, rtol=1e-5)

    # Multi-tile + ragged-batch path (exercises the grid and tail padding).
    B2 = 200
    x2 = jax.random.normal(k_x2, (B2, IN_DIM), dtype=jnp.float32)
    out2 = jax.block_until_ready(net_forward(x2, params, tile_b=64))
    ref2 = reference_forward(x2, params)
    assert out2.shape == (B2, OUT_DIM)
    assert jnp.allclose(out2, ref2, atol=1e-5, rtol=1e-5)

    print("KERNEL_OK")
</pallas_src>

<mosaic_0001>
module attributes {stable_mosaic.version = 11 : i64} {
  func.func @mlp_kernel(%arg0: i32, %arg1: memref<8x2xf32, #tpu.memory_space<vmem>>, %arg2: memref<2x128xf32, #tpu.memory_space<vmem>>, %arg3: memref<1x128xf32, #tpu.memory_space<vmem>>, %arg4: memref<128x128xf32, #tpu.memory_space<vmem>>, %arg5: memref<1x128xf32, #tpu.memory_space<vmem>>, %arg6: memref<128x128xf32, #tpu.memory_space<vmem>>, %arg7: memref<1x128xf32, #tpu.memory_space<vmem>>, %arg8: memref<8x128xf32, #tpu.memory_space<vmem>>) attributes {dimension_semantics = [#tpu.dimension_semantics<parallel>], iteration_bounds = array<i64: 1>, scalar_prefetch = 0 : i64, scratch_operands = 0 : i64, tpu.core_type = #tpu.core_type<tc>, window_params = [{transform_indices = @transform_0, window_bounds = array<i64: 8, 2>}, {pipeline_mode = #tpu.pipeline_mode<synchronous>, transform_indices = @transform_1, window_bounds = array<i64: 2, 128>}, {pipeline_mode = #tpu.pipeline_mode<synchronous>, transform_indices = @transform_2, window_bounds = array<i64: 1, 128>}, {pipeline_mode = #tpu.pipeline_mode<synchronous>, transform_indices = @transform_3, window_bounds = array<i64: 128, 128>}, {pipeline_mode = #tpu.pipeline_mode<synchronous>, transform_indices = @transform_4, window_bounds = array<i64: 1, 128>}, {pipeline_mode = #tpu.pipeline_mode<synchronous>, transform_indices = @transform_5, window_bounds = array<i64: 128, 128>}, {pipeline_mode = #tpu.pipeline_mode<synchronous>, transform_indices = @transform_6, window_bounds = array<i64: 1, 128>}, {transform_indices = @transform_7, window_bounds = array<i64: 8, 128>}]} {
    %c0 = arith.constant 0 : index
    %c0_0 = arith.constant 0 : index
    %0 = vector.load %arg1[%c0, %c0_0] : memref<8x2xf32, #tpu.memory_space<vmem>>, vector<8x2xf32>
    %1 = vector.extract_strided_slice %0 {offsets = [0, 0], sizes = [8, 1], strides = [1, 1]} : vector<8x2xf32> to vector<8x1xf32>
    %c0_1 = arith.constant 0 : index
    %c0_2 = arith.constant 0 : index
    %2 = vector.load %arg2[%c0_1, %c0_2] : memref<2x128xf32, #tpu.memory_space<vmem>>, vector<1x128xf32>
    %3 = vector.broadcast %1 : vector<8x1xf32> to vector<8x128xf32>
    %4 = vector.broadcast %2 : vector<1x128xf32> to vector<8x128xf32>
    %5 = arith.mulf %3, %4 : vector<8x128xf32>
    %6 = vector.extract_strided_slice %0 {offsets = [0, 1], sizes = [8, 1], strides = [1, 1]} : vector<8x2xf32> to vector<8x1xf32>
    %c1 = arith.constant 1 : index
    %c0_3 = arith.constant 0 : index
    %7 = vector.load %arg2[%c1, %c0_3] : memref<2x128xf32, #tpu.memory_space<vmem>>, vector<1x128xf32>
    %8 = vector.broadcast %6 : vector<8x1xf32> to vector<8x128xf32>
    %9 = vector.broadcast %7 : vector<1x128xf32> to vector<8x128xf32>
    %10 = arith.mulf %8, %9 : vector<8x128xf32>
    %11 = arith.addf %5, %10 : vector<8x128xf32>
    %c0_4 = arith.constant 0 : index
    %c0_5 = arith.constant 0 : index
    %12 = vector.load %arg3[%c0_4, %c0_5] : memref<1x128xf32, #tpu.memory_space<vmem>>, vector<1x128xf32>
    %13 = vector.broadcast %12 : vector<1x128xf32> to vector<8x128xf32>
    %14 = arith.addf %11, %13 : vector<8x128xf32>
    %15 = math.tanh %14 : vector<8x128xf32>
    %c0_6 = arith.constant 0 : index
    %c0_7 = arith.constant 0 : index
    %16 = vector.load %arg4[%c0_6, %c0_7] : memref<128x128xf32, #tpu.memory_space<vmem>>, vector<128x128xf32>
    %cst = arith.constant dense<0.000000e+00> : vector<8x128xf32>
    %17 = tpu.matmul %15, %16, %cst {dimension_numbers = #tpu.dot_dimension_numbers<[1], [0], [0], [1], [0, 0, 1, 1], [], []>} : vector<8x128xf32>, vector<128x128xf32>, vector<8x128xf32> -> vector<8x128xf32>
    %c0_8 = arith.constant 0 : index
    %c0_9 = arith.constant 0 : index
    %18 = vector.load %arg5[%c0_8, %c0_9] : memref<1x128xf32, #tpu.memory_space<vmem>>, vector<1x128xf32>
    %19 = vector.broadcast %18 : vector<1x128xf32> to vector<8x128xf32>
    %20 = arith.addf %17, %19 : vector<8x128xf32>
    %21 = math.tanh %20 : vector<8x128xf32>
    %c0_10 = arith.constant 0 : index
    %c0_11 = arith.constant 0 : index
    %22 = vector.load %arg6[%c0_10, %c0_11] : memref<128x128xf32, #tpu.memory_space<vmem>>, vector<128x128xf32>
    %cst_12 = arith.constant dense<0.000000e+00> : vector<8x128xf32>
    %23 = tpu.matmul %21, %22, %cst_12 {dimension_numbers = #tpu.dot_dimension_numbers<[1], [0], [0], [1], [0, 0, 1, 1], [], []>} : vector<8x128xf32>, vector<128x128xf32>, vector<8x128xf32> -> vector<8x128xf32>
    %c0_13 = arith.constant 0 : index
    %c0_14 = arith.constant 0 : index
    %24 = vector.load %arg7[%c0_13, %c0_14] : memref<1x128xf32, #tpu.memory_space<vmem>>, vector<1x128xf32>
    %25 = vector.broadcast %24 : vector<1x128xf32> to vector<8x128xf32>
    %26 = arith.addf %23, %25 : vector<8x128xf32>
    %c0_15 = arith.constant 0 : index
    %c0_16 = arith.constant 0 : index
    %27 = vector.load %arg8[%c0_15, %c0_16] : memref<8x128xf32, #tpu.memory_space<vmem>>, vector<8x128xf32>
    tpu.vector_store %arg8[%c0_15, %c0_16], %26 {strides = array<i32>} : memref<8x128xf32, #tpu.memory_space<vmem>>, vector<8x128xf32>,
    return
  }
  func.func @transform_0(%arg0: i32) -> (i32, i32) {
    %c0_i32 = arith.constant 0 : i32
    %c0_i32_0 = arith.constant 0 : i32
    return %arg0, %c0_i32 : i32, i32
  }
  func.func @transform_1(%arg0: i32) -> (i32, i32) {
    %c0_i32 = arith.constant 0 : i32
    %c0_i32_0 = arith.constant 0 : i32
    %c0_i32_1 = arith.constant 0 : i32
    return %c0_i32, %c0_i32_0 : i32, i32
  }
  func.func @transform_2(%arg0: i32) -> (i32, i32) {
    %c0_i32 = arith.constant 0 : i32
    %c0_i32_0 = arith.constant 0 : i32
    %c0_i32_1 = arith.constant 0 : i32
    return %c0_i32, %c0_i32_0 : i32, i32
  }
  func.func @transform_3(%arg0: i32) -> (i32, i32) {
    %c0_i32 = arith.constant 0 : i32
    %c0_i32_0 = arith.constant 0 : i32
    %c0_i32_1 = arith.constant 0 : i32
    return %c0_i32, %c0_i32_0 : i32, i32
  }
  func.func @transform_4(%arg0: i32) -> (i32, i32) {
    %c0_i32 = arith.constant 0 : i32
    %c0_i32_0 = arith.constant 0 : i32
    %c0_i32_1 = arith.constant 0 : i32
    return %c0_i32, %c0_i32_0 : i32, i32
  }
  func.func @transform_5(%arg0: i32) -> (i32, i32) {
    %c0_i32 = arith.constant 0 : i32
    %c0_i32_0 = arith.constant 0 : i32
    %c0_i32_1 = arith.constant 0 : i32
    return %c0_i32, %c0_i32_0 : i32, i32
  }
  func.func @transform_6(%arg0: i32) -> (i32, i32) {
    %c0_i32 = arith.constant 0 : i32
    %c0_i32_0 = arith.constant 0 : i32
    %c0_i32_1 = arith.constant 0 : i32
    return %c0_i32, %c0_i32_0 : i32, i32
  }
  func.func @transform_7(%arg0: i32) -> (i32, i32) {
    %c0_i32 = arith.constant 0 : i32
    %c0_i32_0 = arith.constant 0 : i32
    return %arg0, %c0_i32 : i32, i32
  }
}

</mosaic_0001>

<bundles_post_ra>
// kernel: tpu_custom_call.1
= control target key start
LH: loop header
LB: loop body
LE: loop exit
PB: predicated region body
PF: predicated region fallthrough
CT: control target
= control target key end

     0   :  { %12 = vsyncpa [#allocation3], 0  ;;  %s352_s0 = inlined_call_operand.vmem [shape: f32[8,2], index: 0, kind: input, shape index: {}]   ;;  %s353_s1 = inlined_call_operand.vmem [shape: f32[2,128], index: 1, kind: input, shape index: {}]   ;;  %s354_s2 = inlined_call_operand.vmem [shape: f32[1,128], index: 2, kind: input, shape index: {}]   ;;  %s355_s3 = inlined_call_operand.hbm [shape: f32[128,128], index: 3, kind: input, shape index: {}]   ;;  %s356_s4 = inlined_call_operand.vmem [shape: f32[1,128], index: 4, kind: input, shape index: {}]   ;;  %s357_s5 = inlined_call_operand.hbm [shape: f32[128,128], index: 5, kind: input, shape index: {}]   ;;  %s358_s6 = inlined_call_operand.vmem [shape: f32[1,128], index: 6, kind: input, shape index: {}]   ;;  %s359_s7 = inlined_call_operand.hbm [shape: f32[8,128], index: 7, kind: output, shape index: {}]  }
   0x1   :  { %13 = vsyncpa [#allocation6], 0 }
   0x2   :  { %14 = vsyncpa [#allocation4], 0  ;;  %s25_s26 = sshll.u32 %s355_s3, 4  ;;  %s278_s27 = smov [#allocation2]   ;;  %s26_s26 = int_to_ptr.hbm [resolvable:$true] %s25_s26 }
   0x3   :  { %s27_s28 = sshll.u32 %s278_s27, 4  ;;  %s40_s8 = sshll.u32 %s357_s5, 4  ;;  %s28_s28 = int_to_ptr.vmem [resolvable:$true] %s27_s28  ;;  %s41_s8 = int_to_ptr.hbm [resolvable:$true] %s40_s8 }
   0x4   :  { %s279_s9 = smov 128   ;;  %s280_s10 = smov 8  }
   0x5   :  { %33 = dma.hbm_to_vmem [thread:$0]  %s26_s26, 2048, %s28_s28, [#allocation3], %s279_s9, %s279_s9, %s280_s10  }
   0x6   :  { %s281_s11 = smov [#allocation5]  }
   0x7   :  { %s42_s12 = sshll.u32 %s281_s11, 4  ;;  %s43_s12 = int_to_ptr.vmem [resolvable:$true] %s42_s12 }
   0x8   :  { %48 = dma.hbm_to_vmem [thread:$0]  %s41_s8, 2048, %s43_s12, [#allocation6], %s279_s9, %s279_s9, %s280_s10  }
   0x9   :  { %272 = dma.done.wait [#allocation3], 2048  }
   0xa   :  { %273 = vsyncadd [#allocation3], 4294965248 }
   0xb   :  { %274 = dma.done.wait [#allocation6], 2048  }
   0xc   :  { %275 = vsyncadd [#allocation6], 4294965248  ;;  %v282_v0 = vmov 0   ;;  %v59_v1 = vld [vmem:[%s352_s0] sm:$0xff]  ;;  %v97_v2 = vld [vmem:[#allocation2 + $0x78] sm:$0xff]  ;;  %v283_v7 = vmov 1  }
   0xd   :  { %189 = vset.pattern.permute.xlu0 %v282_v0  ;;  %v96_v3 = vld [vmem:[#allocation2 + $0x70] sm:$0xff]  ;;  %102 = vmatpush.msra.mxu0 %v97_v2  ;;  %v95_v4 = vld [vmem:[#allocation2 + $0x68] sm:$0xff]  ;;  %v94_v5 = vld [vmem:[#allocation2 + $0x60] sm:$0xff]  ;;  %s284_s20 = smov [#allocation7]   ;;  %s171_s24 = sshll.u32 %s359_s7, 4  ;;  %s172_s24 = int_to_ptr.hbm [resolvable:$true] %s171_s24 }
   0xe   :  { %63 = vperm.xlu0 %189, %v59_v1   ;;  %v93_v6 = vld [vmem:[#allocation2 + $0x58] sm:$0xff]  ;;  %v92_v8 = vld [vmem:[#allocation2 + $0x50] sm:$0xff]  ;;  %v91_v9 = vld [vmem:[#allocation2 + $0x48] sm:$0xff]  ;;  %s169_s21 = sshll.u32 %s284_s20, 4  ;;  %s170_s21 = int_to_ptr.vmem [resolvable:$true] %s169_s21 }
   0xf   :  { %103 = vmatpush.msra.mxu0 %v96_v3  ;;  %v90_v10 = vld [vmem:[#allocation2 + $0x40] sm:$0xff]  ;;  %v89_v11 = vld [vmem:[#allocation2 + $0x38] sm:$0xff]  ;;  %v88_v12 = vld [vmem:[#allocation2 + $0x30] sm:$0xff] }
  0x10   :  { %v87_v13 = vld [vmem:[#allocation2 + $0x28] sm:$0xff]  ;;  %v86_v14 = vld [vmem:[#allocation2 + $0x20] sm:$0xff]  ;;  %v85_v15 = vld [vmem:[#allocation2 + $0x18] sm:$0xff] }
  0x11   :  { %104 = vmatpush.msra.mxu0 %v95_v4  ;;  %v84_v16 = vld [vmem:[#allocation2 + $0x10] sm:$0xff]  ;;  %v83_v17 = vld [vmem:[#allocation2 + $0x8] sm:$0xff]  ;;  %v82_v18 = vld [vmem:[#allocation2] sm:$0xff] }
  0x12   :  { %v138_v19 = vld [vmem:[#allocation5 + $0x78] sm:$0xff]  ;;  %v137_v20 = vld [vmem:[#allocation5 + $0x70] sm:$0xff]  ;;  %v136_v21 = vld [vmem:[#allocation5 + $0x68] sm:$0xff] }
  0x13   :  { %105 = vmatpush.msra.mxu0 %v94_v5  ;;  %143 = vmatpush.msra.mxu1 %v138_v19  ;;  %v135_v22 = vld [vmem:[#allocation5 + $0x60] sm:$0xff]  ;;  %v134_v23 = vld [vmem:[#allocation5 + $0x58] sm:$0xff]  ;;  %v133_v24 = vld [vmem:[#allocation5 + $0x50] sm:$0xff] }
  0x14   :  { %v132_v26 = vld [vmem:[#allocation5 + $0x48] sm:$0xff]  ;;  %v131_v27 = vld [vmem:[#allocation5 + $0x40] sm:$0xff]  ;;  %v130_v28 = vld [vmem:[#allocation5 + $0x38] sm:$0xff] }
  0x15   :  { %106 = vmatpush.msra.mxu0 %v93_v6  ;;  %144 = vmatpush.msra.mxu1 %v137_v20  ;;  %v191_v29 = vld [vmem:[%s353_s1] ss:$0 sm:$0xff]  ;;  %v192_v30 = vld [vmem:[%s353_s1 + $0x1] ss:$0 sm:$0xff]  ;;  %v129_v31 = vld [vmem:[#allocation5 + $0x30] sm:$0xff] }
  0x16   :  { %190 = vset.pattern.permute.xlu0 %v283_v7  ;;  %v128_v33 = vld [vmem:[#allocation5 + $0x28] sm:$0xff]  ;;  %v193_v35 = vld [vmem:[%s354_s2] ss:$0 sm:$0xff]  ;;  %v126_v41 = vld [vmem:[#allocation5 + $0x18] sm:$0xff] }
  0x17   :  { %70 = vperm.xlu0 %190, %v59_v1   ;;  %107 = vmatpush.msra.mxu0 %v92_v8  ;;  %v127_v40 = vld [vmem:[#allocation5 + $0x20] sm:$0xff]  ;;  %v125_v42 = vld [vmem:[#allocation5 + $0x10] sm:$0xff]  ;;  %v124_v43 = vld [vmem:[#allocation5 + $0x8] sm:$0xff] }
  0x18   :  { %145 = vmatpush.msra.mxu1 %v136_v21  ;;  %v123_v44 = vld [vmem:[#allocation5] sm:$0xff] }
  0x19   :  { %108 = vmatpush.msra.mxu0 %v91_v9  ;;  %v194_v45 = vld [vmem:[%s356_s4] ss:$0 sm:$0xff] }
  0x1a   :  { %146 = vmatpush.msra.mxu1 %v135_v22  ;;  %v195_v49 = vld [vmem:[%s358_s6] ss:$0 sm:$0xff] }
  0x1b   :  { %109 = vmatpush.msra.mxu0 %v90_v10 }
  0x1c   :  { %147 = vmatpush.msra.mxu1 %v134_v23 }
  0x1d   :  { %110 = vmatpush.msra.mxu0 %v89_v11 }
  0x1e   :  { %148 = vmatpush.msra.mxu1 %v133_v24 }
  0x1f   :  { %111 = vmatpush.msra.mxu0 %v88_v12 }
  0x20   :  { %149 = vmatpush.msra.mxu1 %v132_v26 }
  0x21   :  { %112 = vmatpush.msra.mxu0 %v87_v13 }
  0x22   :  { %150 = vmatpush.msra.mxu1 %v131_v27 }
  0x23   :  { %113 = vmatpush.msra.mxu0 %v86_v14 }
  0x24   :  { %151 = vmatpush.msra.mxu1 %v130_v28 }
  0x25   :  { %114 = vmatpush.msra.mxu0 %v85_v15 }
  0x26   :  { %152 = vmatpush.msra.mxu1 %v129_v31 }
  0x27   :  { %115 = vmatpush.msra.mxu0 %v84_v16 }
  0x28   :  { %153 = vmatpush.msra.mxu1 %v128_v33 }
  0x29   :  { %116 = vmatpush.msra.mxu0 %v83_v17 }
  0x2a   :  { %154 = vmatpush.msra.mxu1 %v127_v40 }
  0x2b   :  { %117 = vmatpush.msra.mxu0 %v82_v18 }
  0x2c   :  { %155 = vmatpush.msra.mxu1 %v126_v41 }
  0x2e   :  { %156 = vmatpush.msra.mxu1 %v125_v42 }
  0x30   :  { %157 = vmatpush.msra.mxu1 %v124_v43 }
  0x32   :  { %158 = vmatpush.msra.mxu1 %v123_v44 }
  0x80   :  { %v64_v25 = vpop.permute.xlu0 %63 }
  0x81   :  { %v67_v34 = vmul.f32 %v191_v29, %v64_v25 }
  0x89   :  { %v71_v32 = vpop.permute.xlu0 %70 }
  0x8a   :  { %v74_v36 = vmul.f32 %v192_v30, %v71_v32 }
  0x8c   :  { %v75_v37 = vadd.f32 %v74_v36, %v67_v34 }
  0x8e   :  { %v80_v38 = vadd.f32 %v193_v35, %v75_v37 }
  0x90   :  { %196 = vtanh.f32 %v80_v38 }
  0x96   :  { %v197_v39 = vpop.eup %196 }
  0x97   :  { %118 = vmatmul.f32.vlgmr.msra.gmra.mxu0 %v197_v39 }
 0x114   :  { %v119_v46 = vpop.f32.mrf.mxu0 }
 0x115   :  { %v120_v47 = vadd.f32 %v194_v45, %v119_v46 }
 0x117   :  { %198 = vtanh.f32 %v120_v47 }
 0x11d   :  { %v199_v48 = vpop.eup %198 }
 0x11e   :  { %159 = vmatmul.f32.vlgmr.msra.gmra.mxu1 %v199_v48 }
 0x19b   :  { %v160_v50 = vpop.f32.mrf.mxu1 }
 0x19c   :  { %v161_v51 = vadd.f32 %v195_v49, %v160_v50 }
 0x19e   :  { %163 = vst [vmem:[#allocation7] sm:$0xff] %v161_v51 }
 0x19f   :  { %174 = dma.vmem_to_hbm [thread:$0]  %s170_s21, 128, %s172_s24, [#allocation4]  }
 0x1a0   :  { %276 = dma.done.wait [#allocation4], 128  }
 0x1a1   :  { %277 = vsyncadd [#allocation4], 4294967168 }
 0x1a2   :  { %179 = vsyncpa [#allocation3], 1 }
 0x1a3   :  { %180 = vsyncpa [#allocation6], 1 }
 0x1a4   :  { %181 = vsyncpa [#allocation4], 1 }

</bundles_post_ra>
